<compile_context>
chip_gen: v7x
topology: tpu7x:2x2x1
jax: 0.10.0
libtpu: 0.0.40
codegen_flags: <defaults>
</compile_context>

<pallas_src>
import jax
import jax.numpy as jnp
from jax.experimental import pallas as pl
from jax.experimental.pallas import tpu as pltpu

INPUT_SIZE = 28 * 28
N_HIDDEN = 8
OUTPUT_SIZE = 10

# Batch tile. Double-buffered VMEM footprint at TB=2048 with bf16 x:
#   x: 2 * 2048 * 896 * 2B ~ 7 MiB, out: 2 * 2048 * 128 * 4B ~ 2 MiB, weights < 1 MiB
# -> fits v5e / v6e / v7x scoped VMEM with headroom.
DEFAULT_BATCH_TILE = 2048


def _round_up(n, m):
    return ((n + m - 1) // m) * m


def _fc2_kernel(x_ref, w1_ref, b1_ref, w2_ref, b2_ref, w3_ref, b3_ref, o_ref):
    # Layer 1: bf16 x bf16 -> f32 accumulation on the MXU.
    h1 = jnp.dot(x_ref[...], w1_ref[...], preferred_element_type=jnp.float32)
    h1 = jnp.maximum(h1 + b1_ref[...], 0.0)

    # Layers 2 and 3 in f32 (tiny).
    h2 = jnp.dot(h1, w2_ref[...], preferred_element_type=jnp.float32)
    h2 = jnp.maximum(h2 + b2_ref[...], 0.0)
    logits = jnp.dot(h2, w3_ref[...], preferred_element_type=jnp.float32) + b3_ref[...]

    # Numerically stable LogSoftmax(dim=1).
    m = jnp.max(logits, axis=-1, keepdims=True)
    shifted = logits - m
    lse = jnp.log(jnp.sum(jnp.exp(shifted), axis=-1, keepdims=True))
    o_ref[...] = (shifted - lse).astype(o_ref.dtype)


def fc2layer_forward(x_nchw, params, *, batch_tile=DEFAULT_BATCH_TILE):
    """x_nchw: (B, C, H, W) with C*H*W == 784. Returns (B, 10) f32 log-probabilities."""
    w1, b1, w2, b2, w3, b3 = params
    B = x_nchw.shape[0]

    # torch x.view(-1, 784); cast the streamed operands to bf16 (halves HBM bytes).
    x2d = x_nchw.reshape(B, INPUT_SIZE).astype(jnp.bfloat16)
    w1 = w1.astype(jnp.bfloat16)

    # Batch tile: multiple of 16 (bf16 sublane packing), capped at batch_tile.
    tb = min(batch_tile, _round_up(B, 16))
    b_pad = _round_up(B, tb)
    if b_pad != B:
        x2d = jnp.pad(x2d, ((0, b_pad - B), (0, 0)))

    grid = (b_pad // tb,)

    # Advisory cost: classify the custom call as memory-bound for XLA's scheduler.
    flops = 2 * b_pad * (INPUT_SIZE * N_HIDDEN + N_HIDDEN * N_HIDDEN + N_HIDDEN * OUTPUT_SIZE)
    weight_bytes = (INPUT_SIZE * N_HIDDEN * 2 + N_HIDDEN * N_HIDDEN * 4
                    + N_HIDDEN * OUTPUT_SIZE * 4 + (2 * N_HIDDEN + OUTPUT_SIZE) * 4)
    cost = pl.CostEstimate(
        flops=flops,
        transcendentals=b_pad * OUTPUT_SIZE,
        bytes_accessed=b_pad * INPUT_SIZE * 2 + b_pad * OUTPUT_SIZE * 4 + weight_bytes,
    )

    out_pad = pl.pallas_call(
        _fc2_kernel,
        out_shape=jax.ShapeDtypeStruct((b_pad, OUTPUT_SIZE), jnp.float32),
        grid=grid,
        in_specs=[
            pl.BlockSpec((tb, INPUT_SIZE), lambda i: (i, 0)),          # x: streamed tiles
            pl.BlockSpec((INPUT_SIZE, N_HIDDEN), lambda i: (0, 0)),    # w1: resident
            pl.BlockSpec((1, N_HIDDEN), lambda i: (0, 0)),             # b1: resident
            pl.BlockSpec((N_HIDDEN, N_HIDDEN), lambda i: (0, 0)),      # w2: resident
            pl.BlockSpec((1, N_HIDDEN), lambda i: (0, 0)),             # b2: resident
            pl.BlockSpec((N_HIDDEN, OUTPUT_SIZE), lambda i: (0, 0)),   # w3: resident
            pl.BlockSpec((1, OUTPUT_SIZE), lambda i: (0, 0)),          # b3: resident
        ],
        out_specs=pl.BlockSpec((tb, OUTPUT_SIZE), lambda i: (i, 0)),
        compiler_params=pltpu.CompilerParams(
            dimension_semantics=("parallel",),
            vmem_limit_bytes=32 * 1024 * 1024,
        ),
        cost_estimate=cost,
    )(x2d, w1, b1, w2, b2, w3, b3)

    return out_pad[:B]


def init_params(key):
    """Deterministic init. Weights returned as (in, out); biases as (1, out)."""
    ks = jax.random.split(key, 6)

    def linear(kw, kb, fan_in, fan_out):
        # Match torch.nn.Linear default init: U(-1/sqrt(fan_in), 1/sqrt(fan_in))
        bound = 1.0 / jnp.sqrt(fan_in)
        w = jax.random.uniform(kw, (fan_in, fan_out), jnp.float32, -bound, bound)
        b = jax.random.uniform(kb, (1, fan_out), jnp.float32, -bound, bound)
        return w, b

    w1, b1 = linear(ks[0], ks[1], INPUT_SIZE, N_HIDDEN)
    w2, b2 = linear(ks[2], ks[3], N_HIDDEN, N_HIDDEN)
    w3, b3 = linear(ks[4], ks[5], N_HIDDEN, OUTPUT_SIZE)
    return (w1, b1, w2, b2, w3, b3)


def _reference(x_nchw, params):
    # Same math as the kernel (including the bf16 cast of x and w1) in plain JAX.
    w1, b1, w2, b2, w3, b3 = params
    x = x_nchw.reshape(x_nchw.shape[0], INPUT_SIZE)
    x = x.astype(jnp.bfloat16).astype(jnp.float32)
    w1f = w1.astype(jnp.bfloat16).astype(jnp.float32)
    h1 = jnp.maximum(x @ w1f + b1, 0.0)
    h2 = jnp.maximum(h1 @ w2 + b2, 0.0)
    logits = h2 @ w3 + b3
    return jax.nn.log_softmax(logits, axis=1)


if __name__ == "__main__":
    key = jax.random.PRNGKey(0)
    k_x, k_p = jax.random.split(key)

    # Small MNIST-like batch: NCHW (B=2, C=1, H=28, W=28) -> flattened 784 features.
    x = jax.random.normal(k_x, (2, 1, 28, 28), dtype=jnp.float32)
    params = init_params(k_p)

    out = jax.block_until_ready(fc2layer_forward(x, params))

    ref = _reference(x, params)
    assert out.shape == (2, OUTPUT_SIZE)
    assert jnp.allclose(out, ref, atol=1e-3, rtol=1e-3), float(jnp.max(jnp.abs(out - ref)))

    print("KERNEL_OK")
</pallas_src>

<mosaic_0001>
module attributes {stable_mosaic.version = 11 : i64} {
  func.func @_fc2_kernel(%arg0: i32, %arg1: memref<16x784xbf16, #tpu.memory_space<vmem>>, %arg2: memref<784x8xbf16, #tpu.memory_space<vmem>>, %arg3: memref<1x8xf32, #tpu.memory_space<vmem>>, %arg4: memref<8x8xf32, #tpu.memory_space<vmem>>, %arg5: memref<1x8xf32, #tpu.memory_space<vmem>>, %arg6: memref<8x10xf32, #tpu.memory_space<vmem>>, %arg7: memref<1x10xf32, #tpu.memory_space<vmem>>, %arg8: memref<16x10xf32, #tpu.memory_space<vmem>>) attributes {dimension_semantics = [#tpu.dimension_semantics<parallel>], iteration_bounds = array<i64: 1>, scalar_prefetch = 0 : i64, scratch_operands = 0 : i64, tpu.core_type = #tpu.core_type<tc>, window_params = [{transform_indices = @transform_0, window_bounds = array<i64: 16, 784>}, {pipeline_mode = #tpu.pipeline_mode<synchronous>, transform_indices = @transform_1, window_bounds = array<i64: 784, 8>}, {pipeline_mode = #tpu.pipeline_mode<synchronous>, transform_indices = @transform_2, window_bounds = array<i64: 1, 8>}, {pipeline_mode = #tpu.pipeline_mode<synchronous>, transform_indices = @transform_3, window_bounds = array<i64: 8, 8>}, {pipeline_mode = #tpu.pipeline_mode<synchronous>, transform_indices = @transform_4, window_bounds = array<i64: 1, 8>}, {pipeline_mode = #tpu.pipeline_mode<synchronous>, transform_indices = @transform_5, window_bounds = array<i64: 8, 10>}, {pipeline_mode = #tpu.pipeline_mode<synchronous>, transform_indices = @transform_6, window_bounds = array<i64: 1, 10>}, {transform_indices = @transform_7, window_bounds = array<i64: 16, 10>}]} {
    %c0 = arith.constant 0 : index
    %c0_0 = arith.constant 0 : index
    %0 = vector.load %arg1[%c0, %c0_0] : memref<16x784xbf16, #tpu.memory_space<vmem>>, vector<16x784xbf16>
    %c0_1 = arith.constant 0 : index
    %c0_2 = arith.constant 0 : index
    %1 = vector.load %arg2[%c0_1, %c0_2] : memref<784x8xbf16, #tpu.memory_space<vmem>>, vector<784x8xbf16>
    %cst = arith.constant dense<0.000000e+00> : vector<16x8xf32>
    %2 = tpu.matmul %0, %1, %cst {dimension_numbers = #tpu.dot_dimension_numbers<[1], [0], [0], [1], [0, 0, 1, 1], [], []>} : vector<16x784xbf16>, vector<784x8xbf16>, vector<16x8xf32> -> vector<16x8xf32>
    %c0_3 = arith.constant 0 : index
    %c0_4 = arith.constant 0 : index
    %3 = vector.load %arg3[%c0_3, %c0_4] : memref<1x8xf32, #tpu.memory_space<vmem>>, vector<1x8xf32>
    %4 = vector.broadcast %3 : vector<1x8xf32> to vector<16x8xf32>
    %5 = arith.addf %2, %4 : vector<16x8xf32>
    %cst_5 = arith.constant 0.000000e+00 : f32
    %6 = vector.broadcast %cst_5 : f32 to vector<16x8xf32>
    %7 = arith.maximumf %5, %6 : vector<16x8xf32>
    %c0_6 = arith.constant 0 : index
    %c0_7 = arith.constant 0 : index
    %8 = vector.load %arg4[%c0_6, %c0_7] : memref<8x8xf32, #tpu.memory_space<vmem>>, vector<8x8xf32>
    %cst_8 = arith.constant dense<0.000000e+00> : vector<16x8xf32>
    %9 = tpu.matmul %7, %8, %cst_8 {dimension_numbers = #tpu.dot_dimension_numbers<[1], [0], [0], [1], [0, 0, 1, 1], [], []>} : vector<16x8xf32>, vector<8x8xf32>, vector<16x8xf32> -> vector<16x8xf32>
    %c0_9 = arith.constant 0 : index
    %c0_10 = arith.constant 0 : index
    %10 = vector.load %arg5[%c0_9, %c0_10] : memref<1x8xf32, #tpu.memory_space<vmem>>, vector<1x8xf32>
    %11 = vector.broadcast %10 : vector<1x8xf32> to vector<16x8xf32>
    %12 = arith.addf %9, %11 : vector<16x8xf32>
    %cst_11 = arith.constant 0.000000e+00 : f32
    %13 = vector.broadcast %cst_11 : f32 to vector<16x8xf32>
    %14 = arith.maximumf %12, %13 : vector<16x8xf32>
    %c0_12 = arith.constant 0 : index
    %c0_13 = arith.constant 0 : index
    %15 = vector.load %arg6[%c0_12, %c0_13] : memref<8x10xf32, #tpu.memory_space<vmem>>, vector<8x10xf32>
    %cst_14 = arith.constant dense<0.000000e+00> : vector<16x10xf32>
    %16 = tpu.matmul %14, %15, %cst_14 {dimension_numbers = #tpu.dot_dimension_numbers<[1], [0], [0], [1], [0, 0, 1, 1], [], []>} : vector<16x8xf32>, vector<8x10xf32>, vector<16x10xf32> -> vector<16x10xf32>
    %c0_15 = arith.constant 0 : index
    %c0_16 = arith.constant 0 : index
    %17 = vector.load %arg7[%c0_15, %c0_16] : memref<1x10xf32, #tpu.memory_space<vmem>>, vector<1x10xf32>
    %18 = vector.broadcast %17 : vector<1x10xf32> to vector<16x10xf32>
    %19 = arith.addf %16, %18 : vector<16x10xf32>
    %cst_17 = arith.constant dense<0xFF800000> : vector<16xf32>
    %20 = vector.multi_reduction <maximumf>, %19, %cst_17 [1] : vector<16x10xf32> to vector<16xf32>
    %21 = vector.shape_cast %20 : vector<16xf32> to vector<16x1xf32>
    %22 = vector.broadcast %21 : vector<16x1xf32> to vector<16x10xf32>
    %23 = arith.subf %19, %22 : vector<16x10xf32>
    %24 = math.exp %23 : vector<16x10xf32>
    %cst_18 = arith.constant dense<0.000000e+00> : vector<16xf32>
    %25 = vector.multi_reduction <add>, %24, %cst_18 [1] : vector<16x10xf32> to vector<16xf32>
    %26 = vector.shape_cast %25 : vector<16xf32> to vector<16x1xf32>
    %27 = math.log %26 : vector<16x1xf32>
    %28 = vector.broadcast %27 : vector<16x1xf32> to vector<16x10xf32>
    %29 = arith.subf %23, %28 : vector<16x10xf32>
    %c0_19 = arith.constant 0 : index
    %c0_20 = arith.constant 0 : index
    %30 = vector.load %arg8[%c0_19, %c0_20] : memref<16x10xf32, #tpu.memory_space<vmem>>, vector<16x10xf32>
    tpu.vector_store %arg8[%c0_19, %c0_20], %29 {strides = array<i32>} : memref<16x10xf32, #tpu.memory_space<vmem>>, vector<16x10xf32>,
    return
  }
  func.func @transform_0(%arg0: i32) -> (i32, i32) {
    %c0_i32 = arith.constant 0 : i32
    %c0_i32_0 = arith.constant 0 : i32
    return %arg0, %c0_i32 : i32, i32
  }
  func.func @transform_1(%arg0: i32) -> (i32, i32) {
    %c0_i32 = arith.constant 0 : i32
    %c0_i32_0 = arith.constant 0 : i32
    %c0_i32_1 = arith.constant 0 : i32
    return %c0_i32, %c0_i32_0 : i32, i32
  }
  func.func @transform_2(%arg0: i32) -> (i32, i32) {
    %c0_i32 = arith.constant 0 : i32
    %c0_i32_0 = arith.constant 0 : i32
    %c0_i32_1 = arith.constant 0 : i32
    return %c0_i32, %c0_i32_0 : i32, i32
  }
  func.func @transform_3(%arg0: i32) -> (i32, i32) {
    %c0_i32 = arith.constant 0 : i32
    %c0_i32_0 = arith.constant 0 : i32
    %c0_i32_1 = arith.constant 0 : i32
    return %c0_i32, %c0_i32_0 : i32, i32
  }
  func.func @transform_4(%arg0: i32) -> (i32, i32) {
    %c0_i32 = arith.constant 0 : i32
    %c0_i32_0 = arith.constant 0 : i32
    %c0_i32_1 = arith.constant 0 : i32
    return %c0_i32, %c0_i32_0 : i32, i32
  }
  func.func @transform_5(%arg0: i32) -> (i32, i32) {
    %c0_i32 = arith.constant 0 : i32
    %c0_i32_0 = arith.constant 0 : i32
    %c0_i32_1 = arith.constant 0 : i32
    return %c0_i32, %c0_i32_0 : i32, i32
  }
  func.func @transform_6(%arg0: i32) -> (i32, i32) {
    %c0_i32 = arith.constant 0 : i32
    %c0_i32_0 = arith.constant 0 : i32
    %c0_i32_1 = arith.constant 0 : i32
    return %c0_i32, %c0_i32_0 : i32, i32
  }
  func.func @transform_7(%arg0: i32) -> (i32, i32) {
    %c0_i32 = arith.constant 0 : i32
    %c0_i32_0 = arith.constant 0 : i32
    return %arg0, %c0_i32 : i32, i32
  }
}

</mosaic_0001>

<bundles_post_ra>
// kernel: tpu_custom_call.1
= control target key start
LH: loop header
LB: loop body
LE: loop exit
PB: predicated region body
PF: predicated region fallthrough
CT: control target
= control target key end

     0   :  { %v1114_v38 = vmov 0.0   ;;  %vm1115_vm0 = vmmov 0   ;;  %vm470_vm1 = vcmask 130048   ;;  %s1364_s0 = inlined_call_operand.vmem [shape: bf16[16,784], index: 0, kind: input, shape index: {}]   ;;  %s1365_s1 = inlined_call_operand.vmem [shape: bf16[784,8], index: 1, kind: input, shape index: {}]   ;;  %s1366_s2 = inlined_call_operand.vmem [shape: f32[1,8], index: 2, kind: input, shape index: {}]   ;;  %s1367_s3 = inlined_call_operand.vmem [shape: f32[8,8], index: 3, kind: input, shape index: {}]   ;;  %s1368_s4 = inlined_call_operand.vmem [shape: f32[1,8], index: 4, kind: input, shape index: {}]   ;;  %s1369_s5 = inlined_call_operand.vmem [shape: f32[8,10], index: 5, kind: input, shape index: {}]   ;;  %s1370_s6 = inlined_call_operand.vmem [shape: f32[1,10], index: 6, kind: input, shape index: {}]   ;;  %s1371_s7 = inlined_call_operand.hbm [shape: f32[16,10], index: 7, kind: output, shape index: {}]  }
   0x1   :  { %v1023_v0 = vld [vmem:[%s1365_s1 + $0x40] sm:$0xff]   ;;  %v1027_v4 = vld [vmem:[%s1365_s1 + $0x48] sm:$0xff]   ;;  %v1031_v8 = vld [vmem:[%s1365_s1 + $0x50] sm:$0xff]  }
   0x2   :  { %v1024_v1 = vld [vmem:[%s1365_s1] sm:$0xff]   ;;  %928 = vmatprep.subr.bf16.mxu0 %v1023_v0  ;;  %v1028_v5 = vld [vmem:[%s1365_s1 + $0x8] sm:$0xff]   ;;  %v1032_v9 = vld [vmem:[%s1365_s1 + $0x10] sm:$0xff]  }
   0x3   :  { %v1025_v2 = vld [vmem:[%s1365_s1 + $0xc0] sm:$0xff]   ;;  %929 = vmatpush3.bf16.msra.mxu0 %v1024_v1  ;;  %v1029_v6 = vld [vmem:[%s1365_s1 + $0xc8] sm:$0xff]   ;;  %v1033_v10 = vld [vmem:[%s1365_s1 + $0xd0] sm:$0xff]  }
   0x4   :  { %v1026_v3 = vld [vmem:[%s1365_s1 + $0x80] sm:$0xff]   ;;  %950 = vmatprep.subr.bf16.mxu1 %v1025_v2  ;;  %930 = vmatprep.subr.bf16.mxu0 %v1027_v4  ;;  %v1030_v7 = vld [vmem:[%s1365_s1 + $0x88] sm:$0xff]   ;;  %v1034_v11 = vld [vmem:[%s1365_s1 + $0x90] sm:$0xff]  }
   0x5   :  { %951 = vmatpush3.bf16.msra.mxu1 %v1026_v3  ;;  %v1035_v12 = vld [vmem:[%s1365_s1 + $0x58] sm:$0xff]   ;;  %v1039_v16 = vld [vmem:[%s1365_s1 + $0x60] sm:$0xff]   ;;  %v1043_v20 = vld [vmem:[%s1365_s1 + $0x68] sm:$0xff]  }
   0x6   :  { %952 = vmatprep.subr.bf16.mxu1 %v1029_v6  ;;  %v1036_v13 = vld [vmem:[%s1365_s1 + $0x18] sm:$0xff]   ;;  %v1040_v17 = vld [vmem:[%s1365_s1 + $0x20] sm:$0xff]   ;;  %v1044_v21 = vld [vmem:[%s1365_s1 + $0x28] sm:$0xff]  }
   0x7   :  { %931 = vmatpush3.bf16.msra.mxu0 %v1028_v5  ;;  %v1037_v14 = vld [vmem:[%s1365_s1 + $0xd8] sm:$0xff]   ;;  %v1041_v18 = vld [vmem:[%s1365_s1 + $0xe0] sm:$0xff]   ;;  %v1045_v22 = vld [vmem:[%s1365_s1 + $0xe8] sm:$0xff]  }
   0x8   :  { %932 = vmatprep.subr.bf16.mxu0 %v1031_v8  ;;  %v1038_v15 = vld [vmem:[%s1365_s1 + $0x98] sm:$0xff]   ;;  %v1042_v19 = vld [vmem:[%s1365_s1 + $0xa0] sm:$0xff]   ;;  %v1046_v23 = vld [vmem:[%s1365_s1 + $0xa8] sm:$0xff]  }
   0x9   :  { %953 = vmatpush3.bf16.msra.mxu1 %v1030_v7  ;;  %v1047_v24 = vld [vmem:[%s1365_s1 + $0x70] sm:$0xff]   ;;  %v1051_v28 = vld [vmem:[%s1365_s1 + $0x78] sm:$0xff]   ;;  %v1056_v32 = vld [vmem:[%s1364_s0 + $0x4] ss:$28 sps:$4 sm:$0xff]  }
   0xa   :  { %954 = vmatprep.subr.bf16.mxu1 %v1033_v10  ;;  %v1048_v25 = vld [vmem:[%s1365_s1 + $0x30] sm:$0xff]   ;;  %v1052_v29 = vld [vmem:[%s1365_s1 + $0x38] sm:$0xff]   ;;  %506 = vmatprep.mubr.bf16.mxu0 %v1056_v32  ;;  %v1058_v34 = vld [vmem:[%s1365_s1 + $0x140] sm:$0xff]  }
   0xb   :  { %933 = vmatpush3.bf16.msra.mxu0 %v1032_v9  ;;  %v1049_v26 = vld [vmem:[%s1365_s1 + $0xf0] sm:$0xff]   ;;  %v1053_v30 = vld [vmem:[%s1365_s1 + $0xf8] sm:$0xff]   ;;  %v1059_v35 = vld [vmem:[%s1364_s0 + $0x8] ss:$28 sps:$4 sm:$0xff]  }
   0xc   :  { %934 = vmatprep.subr.bf16.mxu0 %v1035_v12  ;;  %v1050_v27 = vld [vmem:[%s1365_s1 + $0xb0] sm:$0xff]   ;;  %v1054_v31 = vld [vmem:[%s1364_s0] ss:$28 sps:$4 sm:$0xff]   ;;  %v1061_v36 = vld [vmem:[%s1364_s0 + $0xc] ss:$28 sps:$4 sm:$0xff]  }
   0xd   :  { %955 = vmatpush3.bf16.msra.mxu1 %v1034_v11  ;;  %v1057_v33 = vld [vmem:[%s1365_s1 + $0xb8] sm:$0xff]   ;;  %v1062_v37 = vld [vmem:[%s1365_s1 + $0x100] sm:$0xff]   ;;  %547 = vmatprep.mubr.bf16.mxu1 %v1061_v36  ;;  %v1063_v39 = vld [vmem:[%s1365_s1 + $0x148] sm:$0xff]  }
   0xe   :  { %956 = vmatprep.subr.bf16.mxu1 %v1037_v14  ;;  %v1064_v40 = vld [vmem:[%s1365_s1 + $0x108] sm:$0xff]   ;;  %v1065_v41 = vld [vmem:[%s1365_s1 + $0x150] sm:$0xff]   ;;  %v1067_v43 = vld [vmem:[%s1365_s1 + $0x158] sm:$0xff]  }
   0xf   :  { %935 = vmatpush3.bf16.msra.mxu0 %v1036_v13  ;;  %v1066_v42 = vld [vmem:[%s1365_s1 + $0x110] sm:$0xff]   ;;  %v1068_v44 = vld [vmem:[%s1365_s1 + $0x118] sm:$0xff]   ;;  %v1069_v45 = vld [vmem:[%s1365_s1 + $0x160] sm:$0xff]  }
  0x10   :  { %936 = vmatprep.subr.bf16.mxu0 %v1039_v16  ;;  %v1070_v46 = vld [vmem:[%s1365_s1 + $0x120] sm:$0xff]   ;;  %v1071_v47 = vld [vmem:[%s1365_s1 + $0x168] sm:$0xff]   ;;  %v1080_v49 = vld [vmem:[%s1364_s0 + $0x14] ss:$28 sps:$4 sm:$0xff]  }
  0x11   :  { %957 = vmatpush3.bf16.msra.mxu1 %v1038_v15  ;;  %v1077_v48 = vld [vmem:[%s1365_s1 + $0x180] sm:$0xff]   ;;  %v1081_v50 = vld [vmem:[%s1364_s0 + $0x18] ss:$28 sps:$4 sm:$0xff]   ;;  %v1072_v51 = vld [vmem:[%s1365_s1 + $0x128] sm:$0xff]  }
  0x12   :  { %958 = vmatprep.subr.bf16.mxu1 %v1041_v18 }
  0x13   :  { %937 = vmatpush3.bf16.msra.mxu0 %v1040_v17 }
  0x14   :  { %938 = vmatprep.subr.bf16.mxu0 %v1043_v20 }
  0x15   :  { %959 = vmatpush3.bf16.msra.mxu1 %v1042_v19 }
  0x16   :  { %960 = vmatprep.subr.bf16.mxu1 %v1045_v22 }
  0x17   :  { %939 = vmatpush3.bf16.msra.mxu0 %v1044_v21 }
  0x18   :  { %940 = vmatprep.subr.bf16.mxu0 %v1047_v24 }
  0x19   :  { %961 = vmatpush3.bf16.msra.mxu1 %v1046_v23 }
  0x1a   :  { %962 = vmatprep.subr.bf16.mxu1 %v1049_v26 }
  0x1b   :  { %941 = vmatpush3.bf16.msra.mxu0 %v1048_v25 }
  0x1c   :  { %942 = vmatprep.subr.bf16.mxu0 %v1051_v28 }
  0x1d   :  { %963 = vmatpush3.bf16.msra.mxu1 %v1050_v27 }
  0x1e   :  { %964 = vmatprep.subr.bf16.mxu1 %v1053_v30 }
  0x1f   :  { %943 = vmatpush3.bf16.msra.mxu0 %v1052_v29 }
  0x20   :  { %972 = vmatprep.subr.bf16.mxu0 %v1058_v34 }
  0x21   :  { %965 = vmatpush3.bf16.msra.mxu1 %v1057_v33 }
  0x22   :  { %507 = vmatmul.mubr.bf16.vlgmr.msra.gmra.mrb[0].mxu0 %v1054_v31  ;;  %1002 = vmatprep.subr.bf16.mxu1 %v1114_v38 }
  0x23   :  { %973 = vmatpush3.bf16.msra.mxu0 %v1062_v37  ;;  %588 = vmatprep.mubr.bf16.mxu0 %v1080_v49 }
  0x24   :  { %548 = vmatmul.mubr.bf16.vlgmr.msra.gmra.mrb[0].mxu1 %v1059_v35  ;;  %974 = vmatprep.subr.bf16.mxu0 %v1063_v39 }
  0x25   :  { %1004 = vmatprep.mubr.msk.bf16.mxu1 %vm1115_vm0, %v1114_v38  ;;  %1003 = vmatpush3.bf16.msra.mxu1 %v1077_v48 }
  0x27   :  { %975 = vmatpush3.bf16.msra.mxu0 %v1064_v40 }
  0x28   :  { %976 = vmatprep.subr.bf16.mxu0 %v1065_v41 }
  0x2b   :  { %977 = vmatpush3.bf16.msra.mxu0 %v1066_v42 }
  0x2c   :  { %978 = vmatprep.subr.bf16.mxu0 %v1067_v43 }
  0x2f   :  { %979 = vmatpush3.bf16.msra.mxu0 %v1068_v44 }
  0x30   :  { %980 = vmatprep.subr.bf16.mxu0 %v1069_v45 }
  0x33   :  { %981 = vmatpush3.bf16.msra.mxu0 %v1070_v46 }
  0x34   :  { %12 = vsyncpa [#allocation3], 0  ;;  %982 = vmatprep.subr.bf16.mxu0 %v1071_v47  ;;  %v1073_v52 = vld [vmem:[%s1365_s1 + $0x170] sm:$0xff]   ;;  %1005 = vmatmul.mubr.msk.bf16.vlgmr.msra.gmra.mrb[4].mxu1 %vm470_vm1, %v1081_v50  ;;  %v1075_v54 = vld [vmem:[%s1365_s1 + $0x178] sm:$0xff]   ;;  %vm648_vm2 = vcmask 64512   ;;  %vm821_vm3 = vcmask 80896  }
  0x35   :  { %v1074_v53 = vld [vmem:[%s1365_s1 + $0x130] sm:$0xff]   ;;  %v1076_v55 = vld [vmem:[%s1365_s1 + $0x138] sm:$0xff]   ;;  %v640_v57 = vld [vmem:[%s1367_s3] sm:$0xff] }
  0x36   :  { %v1078_v56 = vld [vmem:[%s1364_s0 + $0x10] ss:$28 sps:$4 sm:$0xff]   ;;  %1008 = vmatprep.subr.mxu1 %v640_v57  ;;  %v864_v59 = vld [vmem:[%s1366_s2] ss:$0 sm:$0xff] }
  0x37   :  { %983 = vmatpush3.bf16.msra.mxu0 %v1072_v51  ;;  %1009 = vmatpush3.msra.mxu1 %v640_v57  ;;  %v732_v27 = vld [vmem:[%s1369_s5] sm:$0xff] }
  0x38   :  { %984 = vmatprep.subr.bf16.mxu0 %v1073_v52  ;;  %1013 = vmatprep.subr.mxu1 %v732_v27  ;;  %v922_v28 = vld [vmem:[%s1368_s4] ss:$0 sm:$0xff]  ;;  %s1116_s4 = smov [#allocation2]  }
  0x39   :  { %v925_v35 = vld [vmem:[%s1370_s6] ss:$0 sm:$0xff]  ;;  %s853_s5 = sshll.u32 %s1116_s4, 4  ;;  %s854_s5 = int_to_ptr.vmem [resolvable:$true] %s853_s5 }
  0x3a   :  { %s1090_s6 = scalar_lea.vmem %s854_s5, 256  ;;  %p1095_p1 = scmp.lt.s32.totalorder %s854_s5, %s854_s5 }
  0x3b   :  { %985 = vmatpush3.bf16.msra.mxu0 %v1074_v53  ;;  %p1091_p0 = scmp.ne.s32.totalorder %s854_s5, %s1090_s6  ;;  %p1096_p2 = scmp.lt.s32.totalorder %s1090_s6, %s1090_s6 }
  0x3c   :  { %986 = vmatprep.subr.bf16.mxu0 %v1075_v54 }
  0x3d   :  { %p1097_p3 = por %p1096_p2, %p1095_p1 }
  0x3f   :  { %987 = vmatpush3.bf16.msra.mxu0 %v1076_v55  ;;  %p1098_p4 = pnand %p1097_p3, %p1091_p0 }
  0x42   :  { %589 = vmatmul.mubr.bf16.vlgmr.msra.gmra.mrb[4].mxu0 %v1078_v56 }
  0xf5   :  { %v944_v58 = vpop.f32.mrb[0].mxu0 }
  0xf6   :  { %v945_v60 = vpop.f32.mrb[1].mxu0 }
  0xf7   :  { %v946_v61 = vadd.f32 %v945_v60, %v944_v58  ;;  %v947_v62 = vpop.f32.mrb[2].mxu0  ;;  %v966_v63 = vpop.f32.mrb[0].mxu1 }
  0xf8   :  { %v948_v0 = vpop.f32.mrb[3].mxu0  ;;  %v967_v3 = vpop.f32.mrb[1].mxu1 }
  0xf9   :  { %v509_v1 = vadd.f32 %v946_v61, %v864_v59  ;;  %v949_v2 = vadd.f32 %v948_v0, %v947_v62  ;;  %v968_v4 = vadd.f32 %v967_v3, %v966_v63  ;;  %v969_v5 = vpop.f32.mrb[2].mxu1 }
  0xfa   :  { %v970_v7 = vpop.f32.mrb[3].mxu1 }
  0xfb   :  { %v512_v6 = vadd.f32 %v949_v2, %v864_v59  ;;  %v550_v8 = vadd.f32 %v968_v4, %v509_v1  ;;  %v971_v9 = vadd.f32 %v970_v7, %v969_v5 }
  0xfd   :  { %v553_v10 = vadd.f32 %v971_v9, %v512_v6 }
 0x107   :  { %v631_v11 = vpop.f32.mrb[4].mxu1 }
 0x108   :  { %v1006_v12 = vpop.f32.mrb[5].mxu1 }
 0x109   :  { %v634_v13 = vpop.f32.mrb[6].mxu1 }
 0x10a   :  { %v1007_v14 = vpop.f32.mrb[7].mxu1 }
 0x115   :  { %v988_v15 = vpop.f32.mrb[4].mxu0 }
 0x116   :  { %v989_v16 = vpop.f32.mrb[5].mxu0 }
 0x117   :  { %v990_v17 = vadd.f32 %v989_v16, %v988_v15  ;;  %v991_v18 = vpop.f32.mrb[6].mxu0 }
 0x118   :  { %v992_v19 = vpop.f32.mrb[7].mxu0 }
 0x119   :  { %v591_v20 = vadd.f32 %v990_v17, %v550_v8  ;;  %v993_v21 = vadd.f32 %v992_v19, %v991_v18 }
 0x11b   :  { %v632_v22 = vadd.f32 %v631_v11, %v591_v20  ;;  %v594_v23 = vadd.f32 %v993_v21, %v553_v10 }
 0x11d   :  { %v638_v24 = vmax.f32 %v632_v22, 0.0  ;;  %v635_v25 = vadd.f32 %v634_v13, %v594_v23 }
 0x11f   :  { %v639_v26 = vmax.f32 %v635_v25, 0.0  ;;  %1010 = vmatprep.mubr.msk.f32.mxu1 %vm648_vm2, %v638_v24 }
 0x121   :  { %1011 = vmatmul.mubr.msk.f32.vlgmr.msra.gmra.mrb[8].mxu1 %vm648_vm2, %v639_v26 }
 0x122   :  { %1014 = vmatpush3.msra.mxu1 %v732_v27 }
 0x1f4   :  { %v1012_v29 = vpop.f32.mrb[8].mxu1 }
 0x1f5   :  { %v727_v30 = vadd.f32 %v1012_v29, %v922_v28  ;;  %v721_v31 = vpop.f32.mrb[9].mxu1 }
 0x1f6   :  { %v722_v32 = vadd.f32 %v922_v28, %v721_v31 }
 0x1f7   :  { %v731_v34 = vmax.f32 %v727_v30, 0.0 }
 0x1f8   :  { %v730_v33 = vmax.f32 %v722_v32, 0.0 }
 0x1fa   :  { %1015 = vmatprep.mubr.msk.f32.mxu1 %vm648_vm2, %v730_v33 }
 0x1fb   :  { %1016 = vmatmul.mubr.msk.f32.vlgmr.msra.gmra.mrb[10].mxu1 %vm648_vm2, %v731_v34 }
 0x2ce   :  { %v1017_v36 = vpop.f32.mrb[10].mxu1 }
 0x2cf   :  { %v812_v37 = vpop.f32.mrb[11].mxu1  ;;  %v818_v39 = vadd.f32 %v1017_v36, %v925_v35 }
 0x2d0   :  { %v813_v38 = vadd.f32 %v925_v35, %v812_v37 }
 0x2d1   :  { %v825_v41 = vsel %vm821_vm3, %v818_v39, -inf }
 0x2d2   :  { %v822_v40 = vsel %vm821_vm3, %v813_v38, -inf }
 0x2d3   :  { %823 = vmax.xlane.f32.xlu0 %v822_v40 }
 0x2d7   :  { %826 = vmax.xlane.f32.xlu0 %v825_v41 }
 0x360   :  { %v824_v42 = vpop.xlane.xlu0 %823 }
 0x361   :  { %v828_v43 = vsub.f32 %v813_v38, %v824_v42 }
 0x363   :  { %v830_v44 = vmul.f32 1.442695, %v828_v43 }
 0x364   :  { %v827_v45 = vpop.xlane.xlu0 %826 }
 0x365   :  { %1082 = vpow2.f32 %v830_v44  ;;  %v829_v46 = vsub.f32 %v818_v39, %v827_v45 }
 0x367   :  { %v832_v47 = vmul.f32 1.442695, %v829_v46 }
 0x369   :  { %1084 = vpow2.f32 %v832_v47 }
 0x36f   :  { %v1083_v48 = vpop.eup %1082 }
 0x370   :  { %v834_v49 = vsel %vm821_vm3, %v1083_v48, 0.0 }
 0x371   :  { %835 = vadd.xlane.f32.xlu1 %v834_v49 }
 0x373   :  { %v1085_v50 = vpop.eup %1084 }
 0x374   :  { %v837_v51 = vsel %vm821_vm3, %v1085_v50, 0.0 }
 0x375   :  { %838 = vadd.xlane.f32.xlu1 %v837_v51 }
 0x3fe   :  { %v836_v52 = vpop.xlane.xlu1 %835 }
 0x3ff   :  { %1086 = vlog2.f32 %v836_v52 }
 0x402   :  { %v839_v53 = vpop.xlane.xlu1 %838 }
 0x403   :  { %1088 = vlog2.f32 %v839_v53 }
 0x409   :  { %v1087_v54 = vpop.eup %1086 }
 0x40a   :  { %v841_v55 = vmul.f32 0.6931472, %v1087_v54 }
 0x40c   :  { %v844_v56 = vsub.f32 %v828_v43, %v841_v55 }
 0x40d   :  { %v1089_v57 = vpop.eup %1088 }
 0x40e   :  { %846 = vst.msk [vmem:[#allocation2] sm:$0xff] %vm821_vm3, %v844_v56  ;;  %v843_v58 = vmul.f32 0.6931472, %v1089_v57 }
 0x410   :  { %v845_v59 = vsub.f32 %v829_v46, %v843_v58 }
 0x412   :  { %847 = vst.msk [vmem:[#allocation2 + $0x8] sm:$0xff] %vm821_vm3, %v845_v59 }
 0x413   :  { %1101 = shalt.err (!%p1098_p4)
}
 0x414   :  { %s1102_s29 = scalar_lea.hbm %s1371_s7, 256 }
 0x415   :  { %p1103_p5 = scmp.ne.s32.totalorder %s1371_s7, %s1102_s29  ;;  %p1106_p6 = scmp.lt.u32.totalorder %s1102_s29, %s1371_s7 }
 0x417   :  { %p1108_p7 = pnand %p1106_p6, %p1103_p5 }
 0x419   :  { %1111 = shalt.err (!%p1108_p7)
}
 0x41a   :  { %s1117_s11 = smov 128   ;;  %s1118_s12 = smov 8  }
 0x41b   :  { %859 = dma.vmem_to_hbm [thread:$0]  %s854_s5, 256, %s1371_s7, [#allocation3], %s1117_s11, %s1117_s11, %s1118_s12  }
 0x41c   :  { %1112 = dma.done.wait [#allocation3], 256  }
 0x41d   :  { %1113 = vsyncadd [#allocation3], 4294967040 }
 0x41e   :  { %863 = vsyncpa [#allocation3], 1 }

</bundles_post_ra>
